<compile_context>
chip_gen: v6e
topology: v6e:2x2x1
jax: 0.10.0
libtpu: 0.0.40
codegen_flags: <defaults>
</compile_context>

<pallas_src>
import math
import jax
import jax.numpy as jnp
from jax.experimental import pallas as pl
from jax.experimental.pallas import tpu as pltpu


# ---- module "parameters" (deterministic, from __init__ defaults) -------------
MIN_VAL = -38.0
MAX_VAL = 26.0
A = MIN_VAL
K = MAX_VAL
C = 1.0
Q = 1.0
B = 1.0
NU = math.log2(C + Q * math.e) / math.log2((K - A) / -A)
INV_NU = 1.0 / NU

_TARGET_BLOCK_ELEMS = 512 * 1024   # ~2 MiB per block at f32 (1 MiB at bf16)


def _general_logistic_kernel(x_ref, o_ref):
    x = x_ref[...].astype(jnp.float32)
    # out = A + (K - A) / (C + Q * exp(-B * x)) ** (1 / nu)
    # pow via exp/log -> 3 transcendentals / element, all on the EUP slot.
    # Asymptotes are exact: x -> -inf gives denom=inf, log=inf, exp(-inf)=0,
    # out=A; x -> +inf gives denom=1, log=0, exp(0)=1, out=K.
    denom = C + Q * jnp.exp(-B * x)
    out = A + (K - A) * jnp.exp(-INV_NU * jnp.log(denom))
    o_ref[...] = out.astype(o_ref.dtype)


def general_logistic(x):
    """Applies the generalized logistic elementwise. x: any shape (e.g. NCHW)."""
    orig_shape = x.shape
    orig_dtype = x.dtype
    total = int(x.size)
    if total == 0:
        # degenerate empty input: nothing to compute
        return x

    # Widest lane count (multiple of 128) dividing `total` -> free reshape.
    lanes = None
    for cand in (1024, 512, 256, 128):
        if total % cand == 0:
            lanes = cand
            break

    flat = x.reshape(-1)
    if lanes is None:
        # ragged size: minimal pad to a multiple of 128 lanes (rare path)
        lanes = 128
        padded_total = pl.cdiv(total, lanes) * lanes
        flat = jnp.pad(flat, (0, padded_total - total))
    else:
        padded_total = total

    rows = padded_total // lanes
    # block_rows is either the full row extent (any value allowed) or a large
    # multiple of 32 (_TARGET_BLOCK_ELEMS // lanes), so f32/bf16/int8 sublane
    # tiling constraints are always satisfied; the grid uses cdiv so a partial
    # last block is masked by Pallas rather than padded by the wrapper.
    block_rows = min(rows, _TARGET_BLOCK_ELEMS // lanes)
    x2d = flat.reshape(rows, lanes)

    grid = (pl.cdiv(rows, block_rows),)
    itemsize = jnp.dtype(orig_dtype).itemsize

    out2d = pl.pallas_call(
        _general_logistic_kernel,
        out_shape=jax.ShapeDtypeStruct((rows, lanes), orig_dtype),
        grid=grid,
        in_specs=[pl.BlockSpec((block_rows, lanes), lambda i: (i, 0))],
        out_specs=pl.BlockSpec((block_rows, lanes), lambda i: (i, 0)),
        compiler_params=pltpu.CompilerParams(
            # single data-parallel axis: sharded across the 2 TCs on v7x,
            # harmless no-op on v5e/v6e.
            dimension_semantics=("parallel",),
        ),
        cost_estimate=pl.CostEstimate(
            flops=5 * padded_total,
            transcendentals=3 * padded_total,
            bytes_accessed=2 * padded_total * itemsize,
        ),
    )(x2d)

    out_flat = out2d.reshape(-1)
    if padded_total != total:
        out_flat = out_flat[:total]
    return out_flat.reshape(orig_shape)


if __name__ == "__main__":
    key = jax.random.PRNGKey(0)
    # small NCHW input consistent with a conv-style feature map
    x = jax.random.normal(key, (2, 4, 16, 16), dtype=jnp.float32) * 3.0

    out = general_logistic(x)
    out = jax.block_until_ready(out)

    # reference check in plain JAX (same math as the PyTorch forward)
    ref = A + (K - A) / (C + Q * jnp.exp(-B * x)) ** (1.0 / NU)
    assert out.shape == x.shape and out.dtype == x.dtype
    assert jnp.allclose(out, ref, atol=1e-4, rtol=1e-4)

    print("KERNEL_OK")
</pallas_src>

<mosaic_0001>
module attributes {stable_mosaic.version = 11 : i64} {
  func.func @_general_logistic_kernel(%arg0: i32, %arg1: memref<2x1024xf32, #tpu.memory_space<vmem>>, %arg2: memref<2x1024xf32, #tpu.memory_space<vmem>>) attributes {dimension_semantics = [#tpu.dimension_semantics<parallel>], iteration_bounds = array<i64: 1>, scalar_prefetch = 0 : i64, scratch_operands = 0 : i64, tpu.core_type = #tpu.core_type<tc>, window_params = [{transform_indices = @transform_0, window_bounds = array<i64: 2, 1024>}, {transform_indices = @transform_1, window_bounds = array<i64: 2, 1024>}]} {
    %c0 = arith.constant 0 : index
    %c0_0 = arith.constant 0 : index
    %0 = vector.load %arg1[%c0, %c0_0] : memref<2x1024xf32, #tpu.memory_space<vmem>>, vector<2x1024xf32>
    %cst = arith.constant -1.000000e+00 : f32
    %1 = vector.broadcast %cst : f32 to vector<2x1024xf32>
    %2 = arith.mulf %1, %0 : vector<2x1024xf32>
    %3 = math.exp %2 : vector<2x1024xf32>
    %cst_1 = arith.constant 1.000000e+00 : f32
    %4 = vector.broadcast %cst_1 : f32 to vector<2x1024xf32>
    %5 = arith.mulf %4, %3 : vector<2x1024xf32>
    %cst_2 = arith.constant 1.000000e+00 : f32
    %6 = vector.broadcast %cst_2 : f32 to vector<2x1024xf32>
    %7 = arith.addf %6, %5 : vector<2x1024xf32>
    %8 = math.log %7 : vector<2x1024xf32>
    %cst_3 = arith.constant -0.396948248 : f32
    %9 = vector.broadcast %cst_3 : f32 to vector<2x1024xf32>
    %10 = arith.mulf %9, %8 : vector<2x1024xf32>
    %11 = math.exp %10 : vector<2x1024xf32>
    %cst_4 = arith.constant 6.400000e+01 : f32
    %12 = vector.broadcast %cst_4 : f32 to vector<2x1024xf32>
    %13 = arith.mulf %12, %11 : vector<2x1024xf32>
    %cst_5 = arith.constant -3.800000e+01 : f32
    %14 = vector.broadcast %cst_5 : f32 to vector<2x1024xf32>
    %15 = arith.addf %14, %13 : vector<2x1024xf32>
    %c0_6 = arith.constant 0 : index
    %c0_7 = arith.constant 0 : index
    %16 = vector.load %arg2[%c0_6, %c0_7] : memref<2x1024xf32, #tpu.memory_space<vmem>>, vector<2x1024xf32>
    tpu.vector_store %arg2[%c0_6, %c0_7], %15 {strides = array<i32>} : memref<2x1024xf32, #tpu.memory_space<vmem>>, vector<2x1024xf32>,
    return
  }
  func.func @transform_0(%arg0: i32) -> (i32, i32) {
    %c0_i32 = arith.constant 0 : i32
    %c0_i32_0 = arith.constant 0 : i32
    return %arg0, %c0_i32 : i32, i32
  }
  func.func @transform_1(%arg0: i32) -> (i32, i32) {
    %c0_i32 = arith.constant 0 : i32
    %c0_i32_0 = arith.constant 0 : i32
    return %arg0, %c0_i32 : i32, i32
  }
}

</mosaic_0001>

<bundles_post_ra>
// kernel: tpu_custom_call.1
= control target key start
LH: loop header
LB: loop body
LE: loop exit
PB: predicated region body
PF: predicated region fallthrough
CT: control target
= control target key end

     0   :  { %6 = vsyncpa [#allocation3], 0  ;;  %s138_s0 = inlined_call_operand.hbm [shape: f32[2,1024], index: 0, kind: input, shape index: {}]   ;;  %s139_s1 = inlined_call_operand.hbm [shape: f32[2,1024], index: 1, kind: output, shape index: {}]  }
   0x1   :  { %7 = vsyncpa [#allocation4], 0  ;;  %s120_s6 = smov [#allocation2]  }
   0x2   :  { %s14_s7 = sshll.u32 %s120_s6, 4  ;;  %s15_s7 = int_to_ptr.vmem [resolvable:$true] %s14_s7 }
   0x3   :  { %s84_s8 = scalar_lea.vmem %s15_s7, 256  ;;  %p89_p1 = scmp.lt.s32.totalorder %s15_s7, %s15_s7 }
   0x4   :  { %p85_p0 = scmp.ne.s32.totalorder %s15_s7, %s84_s8  ;;  %p90_p2 = scmp.lt.s32.totalorder %s84_s8, %s84_s8 }
   0x6   :  { %p91_p3 = por %p90_p2, %p89_p1 }
   0x8   :  { %p92_p4 = pnand %p91_p3, %p85_p0 }
   0xa   :  { %95 = shalt.err (!%p92_p4)
}
   0xb   :  { %17 = dma.hbm_to_vmem [thread:$0]  %s138_s0, 256, %s15_s7, [#allocation3]  }
   0xc   :  { %116 = dma.done.wait [#allocation3], 256  }
   0xd   :  { %117 = vsyncadd [#allocation3], 4294967040  ;;  %v21_v0 = vld [vmem:[#allocation2] sm:$0xff]  ;;  %v22_v1 = vld [vmem:[#allocation2 + $0x8] sm:$0xff]  ;;  %s121_s0 = smov [#allocation5]  }
   0xe   :  { %v23_v2 = vmul.f32 -1.0, %v21_v0  ;;  %v24_v3 = vmul.f32 -1.0, %v22_v1  ;;  %s53_s11 = sshll.u32 %s121_s0, 4  ;;  %s54_s11 = int_to_ptr.vmem [resolvable:$true] %s53_s11 }
   0xf   :  { %s96_s12 = scalar_lea.vmem %s54_s11, 256  ;;  %p101_p6 = scmp.lt.s32.totalorder %s54_s11, %s54_s11 }
  0x10   :  { %v25_v4 = vmul.f32 1.442695, %v23_v2  ;;  %v27_v5 = vmul.f32 1.442695, %v24_v3  ;;  %p97_p5 = scmp.ne.s32.totalorder %s54_s11, %s96_s12  ;;  %p102_p7 = scmp.lt.s32.totalorder %s96_s12, %s96_s12 }
  0x12   :  { %64 = vpow2.f32 %v25_v4  ;;  %p103_p8 = por %p102_p7, %p101_p6 }
  0x13   :  { %66 = vpow2.f32 %v27_v5 }
  0x14   :  { %p104_p9 = pnand %p103_p8, %p97_p5 }
  0x1f   :  { %v65_v6 = vpop.eup %64 }
  0x20   :  { %v67_v7 = vpop.eup %66  ;;  %v29_v8 = vadd.f32 1.0, %v65_v6 }
  0x21   :  { %v30_v9 = vadd.f32 1.0, %v67_v7 }
  0x22   :  { %68 = vlog2.f32 %v29_v8 }
  0x23   :  { %70 = vlog2.f32 %v30_v9 }
  0x2f   :  { %v69_v10 = vpop.eup %68 }
  0x30   :  { %v71_v11 = vpop.eup %70  ;;  %v32_v12 = vmul.f32 0.6931472, %v69_v10 }
  0x31   :  { %v34_v13 = vmul.f32 0.6931472, %v71_v11 }
  0x32   :  { %v35_v14 = vmul.f32 -0.39694825, %v32_v12 }
  0x33   :  { %v36_v15 = vmul.f32 -0.39694825, %v34_v13 }
  0x34   :  { %v37_v16 = vmul.f32 1.442695, %v35_v14 }
  0x35   :  { %v39_v17 = vmul.f32 1.442695, %v36_v15 }
  0x36   :  { %72 = vpow2.f32 %v37_v16 }
  0x37   :  { %74 = vpow2.f32 %v39_v17 }
  0x43   :  { %v73_v18 = vpop.eup %72 }
  0x44   :  { %v75_v19 = vpop.eup %74  ;;  %v41_v20 = vmul.f32 64.0, %v73_v18 }
  0x45   :  { %v42_v21 = vmul.f32 64.0, %v75_v19 }
  0x46   :  { %v43_v22 = vadd.f32 -38.0, %v41_v20 }
  0x47   :  { %v44_v23 = vadd.f32 -38.0, %v42_v21 }
  0x48   :  { %45 = vst [vmem:[#allocation5] sm:$0xff] %v43_v22 }
  0x49   :  { %46 = vst [vmem:[#allocation5 + $0x8] sm:$0xff] %v44_v23 }
  0x4a   :  { %107 = shalt.err (!%p104_p9)
}
  0x4b   :  { %56 = dma.vmem_to_hbm [thread:$0]  %s54_s11, 256, %s139_s1, [#allocation4]  }
  0x4c   :  { %118 = dma.done.wait [#allocation4], 256  }
  0x4d   :  { %119 = vsyncadd [#allocation4], 4294967040 }
  0x4e   :  { %60 = vsyncpa [#allocation3], 1 }
  0x4f   :  { %61 = vsyncpa [#allocation4], 1 }

</bundles_post_ra>
